<compile_context>
chip_gen: v6e
topology: v6e:2x2x1
jax: 0.10.0
libtpu: 0.0.40
codegen_flags: <defaults>
</compile_context>

<pallas_src>
import functools

import jax
import jax.numpy as jnp
from jax import lax
from jax.experimental import pallas as pl
from jax.experimental.pallas import tpu as pltpu

_MIB = 1024 * 1024


def _round_up(x, m):
    return ((x + m - 1) // m) * m


def _round_down(x, m):
    return (x // m) * m


def _cdiv(a, b):
    return (a + b - 1) // b


def _vmem_limit_bytes():
    """64 MiB scoped limit on 128-MiB parts (v5e/v6e), 48 MiB otherwise
    (v7x only has 64 MiB physical VMEM per TensorCore)."""
    cap = None
    try:
        cap = getattr(pltpu.get_tpu_info(), "vmem_capacity_bytes", None)
    except Exception:
        cap = None
    if cap is None:
        cap = 64 * _MIB
    return 64 * _MIB if cap >= 100 * _MIB else 48 * _MIB


# --------------------------------------------------------------------------
# Kernel 1: fused per-plane masked moments (count, sum p, unique sum p p^T)
#   grid = (cores, tiles_per_core)    ("parallel", "arbitrary")
#   pts_ref  : (3, TN)   lane-dense point tile (anchored coordinates)
#   nrm_ref  : (P, 3)    plane normals
#   dist_ref : (P, 1)    anchored plane distances
#   stat_ref : (P, 10)   per-core accumulator  [1, x, y, z, xx, xy, xz, yy, yz, zz]
# --------------------------------------------------------------------------
def _stats_kernel(thr, n_valid, tile_n, tiles_pc, n_planes,
                  pts_ref, nrm_ref, dist_ref, stat_ref):
    c = pl.program_id(0)          # core split (parallel)
    i = pl.program_id(1)          # N-tile within this core (reduction)

    @pl.when(i == 0)
    def _():
        stat_ref[...] = jnp.zeros_like(stat_ref)

    pts = pts_ref[...]                                        # (3, TN)
    x, y, z = pts[0:1, :], pts[1:2, :], pts[2:3, :]           # (1, TN) each
    nrm = nrm_ref[...]                                        # (P, 3)
    dist = dist_ref[...]                                      # (P, 1)

    if n_planes >= 32:
        # Large P: offload the 3*P*TN FMAs to the (otherwise lightly used)
        # MXU; the VALU is the binding slot in that regime.
        dots = lax.dot_general(nrm, pts, (((1,), (0,)), ((), ())),
                               preferred_element_type=jnp.float32)
    else:
        # Small P: scalar-broadcast FMAs on the VPU (no wasteful K=3 matmul).
        dots = nrm[:, 0:1] * x + nrm[:, 1:2] * y + nrm[:, 2:3] * z  # (P, TN)

    # Pad-lane validity folded into the boolean inlier test (strict '<').
    gidx = (c * tiles_pc + i) * tile_n + lax.broadcasted_iota(
        jnp.int32, (1, tile_n), 1)
    mask = ((jnp.abs(dots - dist) < thr) & (gidx < n_valid)).astype(jnp.float32)

    # 10 unique moment rows (no redundant yx/zx/zy products or rows).
    ones = jnp.ones_like(x)
    aug = jnp.concatenate(
        [ones, pts, x * pts, y * pts[1:3, :], z * pts[2:3, :]], axis=0)  # (10, TN)

    # Single fused MXU pass over K = TN.  Lane-lane contraction (A @ B^T) is
    # the same form the MXU handles natively for q @ k^T in attention.
    stat_ref[...] += lax.dot_general(
        mask, aug, (((1,), (1,)), ((), ())),
        preferred_element_type=jnp.float32)


# --------------------------------------------------------------------------
# Kernel 2: sequential per-plane projection, plane loop inside the kernel.
#   pts_ref : (3, 8, TC)  sublane-dense point tile (anchored, original points)
#   prm_ref : (8*P,)      flat SMEM plane params [n0 n1 n2 d rn0 rn1 rn2 rd]*P
#   out_ref : (3, 8, TC)  projected points (three aligned row-block stores)
# --------------------------------------------------------------------------
def _proj_kernel(thr, n_planes, pts_ref, prm_ref, out_ref):
    x = pts_ref[0]                                            # (8, TC)
    y = pts_ref[1]
    z = pts_ref[2]

    def body(j, carry):
        px, py, pz = carry
        b = j * 8
        n0 = prm_ref[b + 0]
        n1 = prm_ref[b + 1]
        n2 = prm_ref[b + 2]
        d = prm_ref[b + 3]
        r0 = prm_ref[b + 4]
        r1 = prm_ref[b + 5]
        r2 = prm_ref[b + 6]
        rd = prm_ref[b + 7]
        # inlier test against the ORIGINAL points (matches the PyTorch loop)
        pd = jnp.abs(n0 * x + n1 * y + n2 * z - d)            # (8, TC)
        maskf = (pd < thr).astype(jnp.float32)
        # pull masked points onto the refined plane
        dot = r0 * px + r1 * py + r2 * pz
        upd = maskf * (dot - rd)
        return (px - r0 * upd, py - r1 * upd, pz - r2 * upd)

    px, py, pz = lax.fori_loop(0, n_planes, body, (x, y, z),
                               unroll=max(1, min(n_planes, 8)))
    out_ref[0] = px
    out_ref[1] = py
    out_ref[2] = pz


# --------------------------------------------------------------------------
# Wrapper: SVDPlaneProjection.forward
# --------------------------------------------------------------------------
def svd_plane_projection(points, normals, distances, threshold=0.01,
                         *, max_tile_stats=32768, max_tile_proj=131072):
    points = jnp.asarray(points, jnp.float32)
    normals = jnp.asarray(normals, jnp.float32)
    distances = jnp.asarray(distances, jnp.float32).reshape(-1)
    N = points.shape[0]
    P = normals.shape[0]

    # Anchor the cloud at its first point (numerics), shift planes to match.
    anchor = points[0]
    d_shift = distances - normals @ anchor                     # (P,)
    pts_shift = (points - anchor).T                            # (3, N)

    # ---- tile sizing: VMEM-budget aware, kernel-2 tile decoupled ----------
    vmem_limit = _vmem_limit_bytes()
    budget = max(8 * _MIB, vmem_limit - 16 * _MIB)             # working-set cap
    n1024 = _round_up(max(N, 1), 1024)
    tn1 = min(int(max_tile_stats), n1024,
              max(1024, _round_down(budget // ((2 * P + 16) * 4), 1024)))
    tn1 = max(1024, _round_down(tn1, 1024))                    # kernel-1 tile
    k2 = min(4, max(1, int(max_tile_proj) // tn1), _cdiv(n1024, tn1))
    k2 = 4 if k2 >= 4 else (2 if k2 >= 2 else 1)               # power of two
    tn2 = k2 * tn1                                             # kernel-2 tile
    nc = 2 if _cdiv(N, tn1) >= 2 else 1                        # v7x: 2 TCs
    n_pad = _round_up(N, max(tn2, nc * tn1))
    n_tiles1 = n_pad // tn1
    tiles_pc = n_tiles1 // nc
    n_tiles2 = n_pad // tn2

    # Single fused pad of the already-transposed cloud (no zeros().at[].set).
    pts_t = lax.pad(pts_shift, jnp.float32(0),
                    ((0, 0, 0), (0, n_pad - N, 0)))            # (3, n_pad)

    # ---- kernel 1: per-plane masked moments -------------------------------
    stats_part = pl.pallas_call(
        functools.partial(_stats_kernel, threshold, N, tn1, tiles_pc, P),
        grid=(nc, tiles_pc),
        in_specs=[
            pl.BlockSpec((3, tn1), lambda c, i: (0, c * tiles_pc + i)),
            pl.BlockSpec((P, 3), lambda c, i: (0, 0)),
            pl.BlockSpec((P, 1), lambda c, i: (0, 0)),
        ],
        out_specs=pl.BlockSpec((None, P, 10), lambda c, i: (c, 0, 0)),
        out_shape=jax.ShapeDtypeStruct((nc, P, 10), jnp.float32),
        compiler_params=pltpu.CompilerParams(
            dimension_semantics=("parallel", "arbitrary"),
            vmem_limit_bytes=vmem_limit),
    )(pts_t, normals, d_shift.reshape(P, 1))
    stats = stats_part.sum(axis=0)                             # (P, 10)

    counts = stats[:, 0]                                       # (P,)
    sum_p = stats[:, 1:4]                                      # (P, 3)
    sxx, sxy, sxz = stats[:, 4], stats[:, 5], stats[:, 6]
    syy, syz, szz = stats[:, 7], stats[:, 8], stats[:, 9]
    sum_ppT = jnp.stack(
        [jnp.stack([sxx, sxy, sxz], axis=-1),
         jnp.stack([sxy, syy, syz], axis=-1),
         jnp.stack([sxz, syz, szz], axis=-1)], axis=-2)        # (P, 3, 3)

    valid = counts >= 3.0                                      # "< 3 -> skip"
    safe_cnt = jnp.maximum(counts, 1.0)
    centroid = sum_p / safe_cnt[:, None]                       # anchored frame
    cov = sum_ppT - counts[:, None, None] * (centroid[:, :, None]
                                             * centroid[:, None, :])
    # TODO(synk): torch.linalg.svd of the 3x3 covariance has no Pallas
    # primitive; tiny (P,3,3) batched SVD done in plain JAX between kernels.
    _, _, vh = jnp.linalg.svd(cov)
    refined_n = vh[:, 2, :]                                    # smallest right s.v.
    sign = jnp.where(jnp.sum(refined_n * normals, axis=1, keepdims=True) < 0.0,
                     -1.0, 1.0)
    refined_n = refined_n * sign
    refined_d = jnp.sum(centroid * refined_n, axis=1, keepdims=True)
    refined_n = jnp.where(valid[:, None], refined_n, 0.0)      # skip -> no-op
    refined_d = jnp.where(valid[:, None], refined_d, 0.0)

    # Flat 1-D SMEM param table (avoids 2-D SMEM [P,8] -> [*,128] padding).
    params = jnp.concatenate(
        [normals, d_shift[:, None], refined_n, refined_d], axis=1).reshape(-1)

    # ---- kernel 2: sequential per-plane projection, sublane-dense ---------
    cols = n_pad // 8
    tc2 = tn2 // 8
    pts3 = pts_t.reshape(3, 8, cols)                           # free relabeling
    proj3 = pl.pallas_call(
        functools.partial(_proj_kernel, threshold, P),
        grid=(n_tiles2,),
        in_specs=[
            pl.BlockSpec((3, 8, tc2), lambda i: (0, 0, i)),
            pl.BlockSpec(memory_space=pltpu.MemorySpace.SMEM),
        ],
        out_specs=pl.BlockSpec((3, 8, tc2), lambda i: (0, 0, i)),
        out_shape=jax.ShapeDtypeStruct((3, 8, cols), jnp.float32),
        compiler_params=pltpu.CompilerParams(
            dimension_semantics=("parallel",),
            vmem_limit_bytes=vmem_limit),
    )(pts3, params)

    # Un-relabel, strip padding, undo the anchor shift.
    # TODO(synk): callers able to consume the padded (3, n_pad) layout could
    # skip this final transpose pass over the cloud.
    return proj3.reshape(3, n_pad)[:, :N].T + anchor


# --------------------------------------------------------------------------
# Pure-JAX reference (same math, no Pallas) for a correctness check
# --------------------------------------------------------------------------
def reference(points, normals, distances, threshold=0.01):
    P = normals.shape[0]
    dots = points @ normals.T
    maskf = (jnp.abs(dots - distances[None, :]) < threshold).astype(jnp.float32)
    counts = maskf.sum(0)
    valid = counts >= 3.0
    safe = jnp.maximum(counts, 1.0)
    centroid = (maskf.T @ points) / safe[:, None]
    cov = (jnp.einsum('np,na,nb->pab', maskf, points, points)
           - counts[:, None, None] * centroid[:, :, None] * centroid[:, None, :])
    _, _, vh = jnp.linalg.svd(cov)
    rn = vh[:, 2, :]
    sign = jnp.where((rn * normals).sum(1, keepdims=True) < 0.0, -1.0, 1.0)
    rn = rn * sign
    rd = (centroid * rn).sum(1, keepdims=True)
    rn = jnp.where(valid[:, None], rn, 0.0)
    rd = jnp.where(valid[:, None], rd, 0.0)
    proj = points
    for i in range(P):
        m = maskf[:, i:i + 1]
        dot = (proj * rn[i]).sum(1, keepdims=True)
        proj = proj - m * (rn[i] * (dot - rd[i]))
    return proj


# --------------------------------------------------------------------------
# Deterministic test data
# --------------------------------------------------------------------------
def _make_plane_points(key, normals, distances, pts_per_plane, threshold):
    P = normals.shape[0]
    k1, k2 = jax.random.split(key)
    raw = jax.random.uniform(k1, (P, pts_per_plane, 3), jnp.float32, -1.0, 1.0)
    off = jnp.einsum('pnc,pc->pn', raw, normals) - distances[:, None]
    on_plane = raw - off[:, :, None] * normals[:, None, :]
    noise = jax.random.uniform(k2, (P, pts_per_plane, 1),
                               jnp.float32, -0.5, 0.5) * threshold
    return (on_plane + noise * normals[:, None, :]).reshape(-1, 3)


def _make_case(key, n_active, n_total, pts_per_plane, threshold):
    kn, kd, kp = jax.random.split(key, 3)
    normals = jax.random.normal(kn, (n_total, 3), jnp.float32)
    normals = normals / jnp.linalg.norm(normals, axis=1, keepdims=True)
    distances = jax.random.uniform(kd, (n_total,), jnp.float32, -0.5, 0.5)
    if n_total > n_active:
        # Extra planes far from every point: zero inliers -> exercises the
        # "< 3 inliers -> skip" rule.
        distances = distances.at[n_active:].set(50.0)
    # Regenerate until no point sits near any plane's strict-'<' threshold
    # boundary (otherwise the test would be fp-rounding-order dependent).
    points = None
    cand = None
    for _ in range(10):
        kp, sub = jax.random.split(kp)
        cand = _make_plane_points(sub, normals[:n_active], distances[:n_active],
                                  pts_per_plane, threshold)
        pd = jnp.abs(cand @ normals.T - distances[None, :])
        if float(jnp.min(jnp.abs(pd - threshold))) > 1e-4:
            points = cand
            break
    if points is None:
        points = cand
    return points, normals, distances


if __name__ == "__main__":
    key = jax.random.PRNGKey(0)
    k_case1, k_case2 = jax.random.split(key)
    threshold = 0.01

    # Case 1: module-default small shapes (P=4 planes, N=256 points).
    pts1, nrm1, dst1 = _make_case(k_case1, 4, 4, 64, threshold)
    out1 = jax.block_until_ready(
        svd_plane_projection(pts1, nrm1, dst1, threshold=threshold))
    ref1 = reference(pts1, nrm1, dst1, threshold=threshold)
    assert out1.shape == pts1.shape and out1.dtype == jnp.float32
    assert float(jnp.max(jnp.abs(out1 - ref1))) < 1e-3

    # Case 2: multi-tile / padded-lane / two-core-stats / empty-plane path.
    # N = 2499 (not a multiple of 128), small forced tiles -> 4 stats tiles
    # split over the 2-core grid axis, 2 projection tiles, 1 plane with
    # zero inliers.
    pts2, nrm2, dst2 = _make_case(k_case2, 3, 4, 833, threshold)
    out2 = jax.block_until_ready(
        svd_plane_projection(pts2, nrm2, dst2, threshold=threshold,
                             max_tile_stats=1024, max_tile_proj=2048))
    ref2 = reference(pts2, nrm2, dst2, threshold=threshold)
    assert out2.shape == pts2.shape and out2.dtype == jnp.float32
    assert float(jnp.max(jnp.abs(out2 - ref2))) < 1e-3

    print("KERNEL_OK")
</pallas_src>

<mosaic_0001>
module attributes {stable_mosaic.version = 11 : i64} {
  func.func @_stats_kernel(%arg0: i32, %arg1: i32, %arg2: memref<3x1024xf32, #tpu.memory_space<vmem>>, %arg3: memref<4x3xf32, #tpu.memory_space<vmem>>, %arg4: memref<4x1xf32, #tpu.memory_space<vmem>>, %arg5: memref<1x4x10xf32, #tpu.memory_space<vmem>>) attributes {dimension_semantics = [#tpu.dimension_semantics<parallel>, #tpu.dimension_semantics<arbitrary>], iteration_bounds = array<i64: 1, 1>, scalar_prefetch = 0 : i64, scratch_operands = 0 : i64, tpu.core_type = #tpu.core_type<tc>, window_params = [{transform_indices = @transform_0, window_bounds = array<i64: 3, 1024>}, {pipeline_mode = #tpu.pipeline_mode<synchronous>, transform_indices = @transform_1, window_bounds = array<i64: 4, 3>}, {pipeline_mode = #tpu.pipeline_mode<synchronous>, transform_indices = @transform_2, window_bounds = array<i64: 4, 1>}, {transform_indices = @transform_3, window_bounds = array<i64: 1, 4, 10>}]} {
    %c0_i32 = arith.constant 0 : i32
    %0 = arith.cmpi eq, %arg1, %c0_i32 : i32
    %1 = arith.extui %0 : i1 to i32
    %c0_i32_0 = arith.constant 0 : i32
    %2 = arith.cmpi ne, %1, %c0_i32_0 : i32
    scf.if %2 {
      %cst_14 = arith.constant 0.000000e+00 : f32
      %56 = vector.broadcast %cst_14 : f32 to vector<4x10xf32>
      %c0_15 = arith.constant 0 : index
      %c0_16 = arith.constant 0 : index
      %c0_17 = arith.constant 0 : index
      %57 = vector.load %arg5[%c0_15, %c0_16, %c0_17] : memref<1x4x10xf32, #tpu.memory_space<vmem>>, vector<1x4x10xf32>
      %58 = vector.shape_cast %57 : vector<1x4x10xf32> to vector<4x10xf32>
      %59 = vector.shape_cast %56 : vector<4x10xf32> to vector<1x4x10xf32>
      tpu.vector_store %arg5[%c0_15, %c0_16, %c0_17], %59 {strides = array<i32>} : memref<1x4x10xf32, #tpu.memory_space<vmem>>, vector<1x4x10xf32>,
    } else {
    }
    %c0 = arith.constant 0 : index
    %c0_1 = arith.constant 0 : index
    %3 = vector.load %arg2[%c0, %c0_1] : memref<3x1024xf32, #tpu.memory_space<vmem>>, vector<3x1024xf32>
    %4 = vector.extract_strided_slice %3 {offsets = [0, 0], sizes = [1, 1024], strides = [1, 1]} : vector<3x1024xf32> to vector<1x1024xf32>
    %5 = vector.extract_strided_slice %3 {offsets = [1, 0], sizes = [1, 1024], strides = [1, 1]} : vector<3x1024xf32> to vector<1x1024xf32>
    %6 = vector.extract_strided_slice %3 {offsets = [2, 0], sizes = [1, 1024], strides = [1, 1]} : vector<3x1024xf32> to vector<1x1024xf32>
    %c0_2 = arith.constant 0 : index
    %c0_3 = arith.constant 0 : index
    %7 = vector.load %arg3[%c0_2, %c0_3] : memref<4x3xf32, #tpu.memory_space<vmem>>, vector<4x3xf32>
    %c0_4 = arith.constant 0 : index
    %c0_5 = arith.constant 0 : index
    %8 = vector.load %arg4[%c0_4, %c0_5] : memref<4x1xf32, #tpu.memory_space<vmem>>, vector<4x1xf32>
    %9 = vector.extract_strided_slice %7 {offsets = [0, 0], sizes = [4, 1], strides = [1, 1]} : vector<4x3xf32> to vector<4x1xf32>
    %10 = vector.broadcast %9 : vector<4x1xf32> to vector<4x1024xf32>
    %11 = vector.broadcast %4 : vector<1x1024xf32> to vector<4x1024xf32>
    %12 = arith.mulf %10, %11 : vector<4x1024xf32>
    %13 = vector.extract_strided_slice %7 {offsets = [0, 1], sizes = [4, 1], strides = [1, 1]} : vector<4x3xf32> to vector<4x1xf32>
    %14 = vector.broadcast %13 : vector<4x1xf32> to vector<4x1024xf32>
    %15 = vector.broadcast %5 : vector<1x1024xf32> to vector<4x1024xf32>
    %16 = arith.mulf %14, %15 : vector<4x1024xf32>
    %17 = arith.addf %12, %16 : vector<4x1024xf32>
    %18 = vector.extract_strided_slice %7 {offsets = [0, 2], sizes = [4, 1], strides = [1, 1]} : vector<4x3xf32> to vector<4x1xf32>
    %19 = vector.broadcast %18 : vector<4x1xf32> to vector<4x1024xf32>
    %20 = vector.broadcast %6 : vector<1x1024xf32> to vector<4x1024xf32>
    %21 = arith.mulf %19, %20 : vector<4x1024xf32>
    %22 = arith.addf %17, %21 : vector<4x1024xf32>
    %c1_i32 = arith.constant 1 : i32
    %23 = arith.muli %arg0, %c1_i32 : i32
    %24 = arith.addi %23, %arg1 : i32
    %c1024_i32 = arith.constant 1024 : i32
    %25 = arith.muli %24, %c1024_i32 : i32
    %26 = tpu.iota {dimensions = array<i32: 1>} : vector<1x1024xi32>
    %27 = vector.broadcast %25 : i32 to vector<1x1024xi32>
    %28 = arith.addi %27, %26 : vector<1x1024xi32>
    %29 = vector.broadcast %8 : vector<4x1xf32> to vector<4x1024xf32>
    %30 = arith.subf %22, %29 : vector<4x1024xf32>
    %31 = math.absf %30 : vector<4x1024xf32>
    %cst = arith.constant 0.00999999977 : f32
    %32 = vector.broadcast %cst : f32 to vector<4x1024xf32>
    %33 = arith.cmpf olt, %31, %32 : vector<4x1024xf32>
    %c256_i32 = arith.constant 256 : i32
    %34 = vector.broadcast %c256_i32 : i32 to vector<1x1024xi32>
    %35 = arith.cmpi slt, %28, %34 : vector<1x1024xi32>
    %36 = vector.broadcast %35 : vector<1x1024xi1> to vector<4x1024xi1>
    %37 = arith.andi %33, %36 : vector<4x1024xi1>
    %38 = arith.extui %37 : vector<4x1024xi1> to vector<4x1024xi32>
    %39 = arith.sitofp %38 : vector<4x1024xi32> to vector<4x1024xf32>
    %cst_6 = arith.constant 1.000000e+00 : f32
    %40 = vector.broadcast %cst_6 : f32 to vector<1x1024xf32>
    %41 = vector.broadcast %4 : vector<1x1024xf32> to vector<3x1024xf32>
    %42 = arith.mulf %41, %3 : vector<3x1024xf32>
    %43 = vector.extract_strided_slice %3 {offsets = [1, 0], sizes = [2, 1024], strides = [1, 1]} : vector<3x1024xf32> to vector<2x1024xf32>
    %44 = vector.broadcast %5 : vector<1x1024xf32> to vector<2x1024xf32>
    %45 = arith.mulf %44, %43 : vector<2x1024xf32>
    %46 = vector.extract_strided_slice %3 {offsets = [2, 0], sizes = [1, 1024], strides = [1, 1]} : vector<3x1024xf32> to vector<1x1024xf32>
    %47 = arith.mulf %6, %46 : vector<1x1024xf32>
    %48 = tpu.concatenate %40, %3, %42, %45, %47 in 0 : vector<1x1024xf32>, vector<3x1024xf32>, vector<3x1024xf32>, vector<2x1024xf32>, vector<1x1024xf32> -> vector<10x1024xf32>
    %c0_7 = arith.constant 0 : index
    %c0_8 = arith.constant 0 : index
    %c0_9 = arith.constant 0 : index
    %49 = vector.load %arg5[%c0_7, %c0_8, %c0_9] : memref<1x4x10xf32, #tpu.memory_space<vmem>>, vector<1x4x10xf32>
    %50 = vector.shape_cast %49 : vector<1x4x10xf32> to vector<4x10xf32>
    %cst_10 = arith.constant dense<0.000000e+00> : vector<4x10xf32>
    %51 = tpu.matmul %39, %48, %cst_10 {dimension_numbers = #tpu.dot_dimension_numbers<[1], [1], [0], [0], [0, 0, 1, 0], [], []>} : vector<4x1024xf32>, vector<10x1024xf32>, vector<4x10xf32> -> vector<4x10xf32>
    %52 = arith.addf %50, %51 : vector<4x10xf32>
    %c0_11 = arith.constant 0 : index
    %c0_12 = arith.constant 0 : index
    %c0_13 = arith.constant 0 : index
    %53 = vector.load %arg5[%c0_11, %c0_12, %c0_13] : memref<1x4x10xf32, #tpu.memory_space<vmem>>, vector<1x4x10xf32>
    %54 = vector.shape_cast %53 : vector<1x4x10xf32> to vector<4x10xf32>
    %55 = vector.shape_cast %52 : vector<4x10xf32> to vector<1x4x10xf32>
    tpu.vector_store %arg5[%c0_11, %c0_12, %c0_13], %55 {strides = array<i32>} : memref<1x4x10xf32, #tpu.memory_space<vmem>>, vector<1x4x10xf32>,
    return
  }
  func.func @transform_0(%arg0: i32, %arg1: i32) -> (i32, i32) {
    %c1_i32 = arith.constant 1 : i32
    %0 = arith.muli %arg0, %c1_i32 : i32
    %1 = arith.addi %0, %arg1 : i32
    %c0_i32 = arith.constant 0 : i32
    %c0_i32_0 = arith.constant 0 : i32
    return %c0_i32, %1 : i32, i32
  }
  func.func @transform_1(%arg0: i32, %arg1: i32) -> (i32, i32) {
    %c0_i32 = arith.constant 0 : i32
    %c0_i32_0 = arith.constant 0 : i32
    %c0_i32_1 = arith.constant 0 : i32
    return %c0_i32, %c0_i32_0 : i32, i32
  }
  func.func @transform_2(%arg0: i32, %arg1: i32) -> (i32, i32) {
    %c0_i32 = arith.constant 0 : i32
    %c0_i32_0 = arith.constant 0 : i32
    %c0_i32_1 = arith.constant 0 : i32
    return %c0_i32, %c0_i32_0 : i32, i32
  }
  func.func @transform_3(%arg0: i32, %arg1: i32) -> (i32, i32, i32) {
    %c0_i32 = arith.constant 0 : i32
    %c0_i32_0 = arith.constant 0 : i32
    %c0_i32_1 = arith.constant 0 : i32
    return %arg0, %c0_i32, %c0_i32_0 : i32, i32, i32
  }
}

</mosaic_0001>

<bundles_post_ra>
// kernel: tpu_custom_call.1
= control target key start
LH: loop header
LB: loop body
LE: loop exit
PB: predicated region body
PF: predicated region fallthrough
CT: control target
= control target key end

     0   :  { %8 = vsyncpa [#allocation3], 0  ;;  %s1180_s0 = inlined_call_operand.hbm [shape: f32[3,1024], index: 0, kind: input, shape index: {}]   ;;  %s1181_s1 = inlined_call_operand.vmem [shape: f32[4,3], index: 1, kind: input, shape index: {}]   ;;  %s1182_s2 = inlined_call_operand.vmem [shape: f32[4,1], index: 2, kind: input, shape index: {}]   ;;  %s1183_s3 = inlined_call_operand.hbm [shape: f32[1,4,10], index: 3, kind: output, shape index: {}]  }
   0x1   :  { %9 = vsyncpa [#allocation4], 0  ;;  %s965_s12 = smov [#allocation2]  }
   0x2   :  { %s20_s13 = sshll.u32 %s965_s12, 4  ;;  %s21_s13 = int_to_ptr.vmem [resolvable:$true] %s20_s13 }
   0x3   :  { %s929_s14 = scalar_lea.vmem %s21_s13, 512  ;;  %p934_p1 = scmp.lt.s32.totalorder %s21_s13, %s21_s13 }
   0x4   :  { %p930_p0 = scmp.ne.s32.totalorder %s21_s13, %s929_s14  ;;  %p935_p2 = scmp.lt.s32.totalorder %s929_s14, %s929_s14 }
   0x6   :  { %p936_p3 = por %p935_p2, %p934_p1 }
   0x8   :  { %p937_p4 = pnand %p936_p3, %p930_p0 }
   0xa   :  { %940 = shalt.err (!%p937_p4)
}
   0xb   :  { %23 = dma.hbm_to_vmem [thread:$0]  %s1180_s0, 512, %s21_s13, [#allocation3]  }
   0xc   :  { %961 = dma.done.wait [#allocation3], 512  }
   0xd   :  { %962 = vsyncadd [#allocation3], 4294966784  ;;  %vm37_vm0 = vcmask 76800   ;;  %v966_v0 = vmov 0.0   ;;  %v967_v1 = vmov 0   ;;  %v54_v2 = vlaneseq }
   0xe   :  { %38 = vst.msk [vmem:[#allocation5] sm:$0xf] %vm37_vm0, %v966_v0  ;;  %912 = vset.pattern.permute.xlu0 %v967_v1  ;;  %737 = vmatprep.mubr.f32.mxu1 %v966_v0  ;;  %v968_v3 = vmov 2   ;;  %v43_v11 = vld [vmem:[%s1181_s1] sm:$0xf]  ;;  %v969_v31 = vmov 1  }
   0xf   :  { %914 = vset.pattern.permute.xlu1 %v968_v3  ;;  %v55_v4 = vshrl.u32 %v54_v2, 7  ;;  %v1014_v12 = vld [vmem:[#allocation2] sm:$0x77]  ;;  %47 = vperm.xlu0 %912, %v43_v11   ;;  %v1042_v26 = vld [vmem:[#allocation2 + $0x8] sm:$0x77]  ;;  %vm567_vm1 = vcmask 1040384  }
  0x10   :  { %227 = vperm.xlu1 %914, %v43_v11   ;;  %v415_v15 = vcombine.high %v1014_v12, %v1014_v12  ;;  %v431_v16 = vrot.slane %v1014_v12, 1  ;;  %v44_v21 = vld [vmem:[%s1182_s2] sm:$0xf]  ;;  %v455_v25 = vmul.f32 %v1014_v12, %v1014_v12  ;;  %v433_v38 = vrot.slane %v1042_v26, 1  ;;  %s971_s2 = smov [#allocation5]  }
  0x11   :  { %v999_v5 = vsub.s32 0, %v55_v4  ;;  %v1001_v6 = vsub.s32 4, %v55_v4  ;;  %v1003_v7 = vsub.s32 1, %v55_v4  ;;  %v1005_v8 = vsub.s32 5, %v55_v4  ;;  %s892_s19 = sshll.u32 %s971_s2, 4  ;;  %s893_s19 = int_to_ptr.vmem [resolvable:$true] %s892_s19 }
  0x12   :  { %v1007_v9 = vsub.s32 2, %v55_v4  ;;  %v1009_v10 = vsub.s32 6, %v55_v4  ;;  %v432_v24 = vrot.slane %v415_v15, 1  ;;  %v416_v41 = vcombine.high %v1042_v26, %v1042_v26  ;;  %s941_s20 = scalar_lea.vmem %s893_s19, 64  ;;  %p946_p6 = scmp.lt.s32.totalorder %s893_s19, %s893_s19 }
  0x13   :  { %v57_v13 = vrot.slane %v1014_v12, %v999_v5  ;;  %v61_v14 = vrot.slane %v1014_v12, %v1001_v6  ;;  %v141_v17 = vrot.slane %v1014_v12, %v1003_v7  ;;  %v145_v18 = vrot.slane %v1014_v12, %v1005_v8  ;;  %913 = vset.pattern.permute.xlu0 %v969_v31  ;;  %p942_p5 = scmp.ne.s32.totalorder %s893_s19, %s941_s20  ;;  %p947_p7 = scmp.lt.s32.totalorder %s941_s20, %s941_s20 }
  0x14   :  { %v233_v19 = vrot.slane %v1014_v12, %v1007_v9  ;;  %v237_v20 = vrot.slane %v1014_v12, %v1009_v10  ;;  %915 = vset.pattern.permute.xlu1 %v967_v1  ;;  %v534_v34 = vrot.slane %v455_v25, %v1009_v10  ;;  %135 = vperm.xlu0 %913, %v43_v11   ;;  %v434_v47 = vrot.slane %v416_v41, 1  ;;  %v1091_v11 = vld [vmem:[#allocation2 + $0x10] sm:$0x77] }
  0x15   :  { %v1035_v22 = vrot.slane %v57_v13, %v999_v5  ;;  %v1038_v23 = vrot.slane %v61_v14, %v999_v5  ;;  %v1045_v27 = vrot.slane %v141_v17, %v1003_v7  ;;  %v1048_v28 = vrot.slane %v145_v18, %v1003_v7  ;;  %340 = vperm.xlu1 %915, %v44_v21   ;;  %p948_p8 = por %p947_p7, %p946_p6 }
  0x16   :  { %v1051_v29 = vrot.slane %v233_v19, %v1007_v9  ;;  %v1054_v30 = vrot.slane %v237_v20, %v1007_v9  ;;  %v153_v37 = vrot.slane %v1042_v26, %v1005_v8  ;;  %v456_v42 = vmul.f32 %v1042_v26, %v1042_v26 }
  0x17   :  { %v423_v32 = vmul.f32 %v1035_v22, %v1014_v12  ;;  %v424_v33 = vmul.f32 %v415_v15, %v1038_v23  ;;  %v447_v35 = vmul.f32 %v431_v16, %v1045_v27  ;;  %v448_v36 = vmul.f32 %v432_v24, %v1048_v28  ;;  %v1095_v16 = vld [vmem:[#allocation2 + $0x18] sm:$0x77]  ;;  %p949_p9 = pnand %p948_p8, %p942_p5 }
  0x18   :  { %v193_v44 = vrot.slane %v153_v37, %v1003_v7  ;;  %v530_v46 = vrot.slane %v455_v25, %v1007_v9  ;;  %v542_v48 = vrot.slane %v456_v42, %v1009_v10  ;;  %v149_v49 = vrot.slane %v1042_v26, %v1003_v7  ;;  %916 = vset.pattern.permute.xlu0 %v967_v1 }
  0x19   :  { %v483_v39 = vrot.slane %v423_v32, 4  ;;  %v484_v40 = vrot.slane %v424_v33, 4  ;;  %v508_v43 = vrot.slane %v448_v36, 1  ;;  %v507_v45 = vrot.slane %v447_v35, 1 }
  0x1a   :  { %v538_v50 = vrot.slane %v456_v42, %v1007_v9  ;;  %v460_v53 = vrot.slane %v415_v15, 7  ;;  %vm576_vm2 = vcmask 1043456   ;;  %v450_v54 = vmul.f32 %v434_v47, %v193_v44 }
  0x1b   :  { %v595_v51 = vsel %vm567_vm1, %v508_v43, %v534_v34  ;;  %v594_v52 = vsel %vm567_vm1, %v507_v45, %v530_v46  ;;  %v189_v55 = vrot.slane %v149_v49, %v1003_v7  ;;  %vm585_vm3 = vcmask 1046528  }
  0x1c   :  { %631 = vmatprep.subr.mxu0 %v595_v51  ;;  %v69_v56 = vrot.slane %v1042_v26, %v1001_v6  ;;  %v569_v57 = vsel %vm567_vm1, 1.0, %v460_v53  ;;  %v462_v58 = vrot.slane %v416_v41, 7  ;;  %v459_v59 = vrot.slane %v1014_v12, 7 }
  0x1d   :  { %632 = vmatpush1.xpose.msra.mxu0 %v594_v52  ;;  %v65_v60 = vrot.slane %v1042_v26, %v999_v5  ;;  %v510_v61 = vrot.slane %v450_v54, 1  ;;  %v449_v62 = vmul.f32 %v433_v38, %v189_v55  ;;  %v578_v63 = vsel %vm576_vm2, %v569_v57, %v484_v40 }
  0x1e   :  { %v109_v1 = vrot.slane %v69_v56, %v999_v5  ;;  %v587_v2 = vsel %vm585_vm3, %v578_v63, %v508_v43  ;;  %v568_v3 = vsel %vm567_vm1, 1.0, %v459_v59  ;;  %v571_v17 = vsel %vm567_vm1, 1.0, %v462_v58 }
  0x1f   :  { %v105_v4 = vrot.slane %v65_v60, %v999_v5  ;;  %v597_v13 = vsel %vm567_vm1, %v510_v61, %v542_v48  ;;  %v509_v12 = vrot.slane %v449_v62, 1  ;;  %633 = vmatprep.subr.mxu0 %v587_v2  ;;  %v577_v15 = vsel %vm576_vm2, %v568_v3, %v483_v39 }
  0x20   :  { %v426_v14 = vmul.f32 %v416_v41, %v109_v1  ;;  %701 = vmatprep.subr.mxu1 %v597_v13  ;;  %v586_v18 = vsel %vm585_vm3, %v577_v15, %v507_v45  ;;  %v461_v20 = vrot.slane %v1042_v26, 7  ;;  %v161_v25 = vrot.slane %v1091_v11, %v1005_v8 }
  0x21   :  { %v425_v19 = vmul.f32 %v105_v4, %v1042_v26  ;;  %v596_v21 = vsel %vm567_vm1, %v509_v12, %v538_v50  ;;  %634 = vmatpush1.xpose.msra.mxu0 %v586_v18  ;;  %v417_v31 = vcombine.high %v1091_v11, %v1091_v11  ;;  %v457_v34 = vmul.f32 %v1091_v11, %v1091_v11 }
  0x22   :  { %v486_v24 = vrot.slane %v426_v14, 4  ;;  %702 = vmatpush1.xpose.msra.mxu1 %v596_v21  ;;  %v570_v33 = vsel %vm567_vm1, 1.0, %v461_v20  ;;  %v169_v26 = vrot.slane %v1095_v16, %v1005_v8  ;;  %v201_v36 = vrot.slane %v161_v25, %v1003_v7 }
  0x23   :  { %v485_v32 = vrot.slane %v425_v19, 4  ;;  %v436_v37 = vrot.slane %v417_v31, 1  ;;  %v418_v38 = vcombine.high %v1095_v16, %v1095_v16  ;;  %v550_v41 = vrot.slane %v457_v34, %v1009_v10 }
  0x24   :  { %v580_v35 = vsel %vm576_vm2, %v571_v17, %v486_v24  ;;  %v209_v42 = vrot.slane %v169_v26, %v1003_v7  ;;  %v458_v45 = vmul.f32 %v1095_v16, %v1095_v16  ;;  %v157_v46 = vrot.slane %v1091_v11, %v1003_v7 }
  0x25   :  { %v589_v39 = vsel %vm585_vm3, %v580_v35, %v510_v61  ;;  %v579_v40 = vsel %vm576_vm2, %v570_v33, %v485_v32  ;;  %v452_v8 = vmul.f32 %v436_v37, %v201_v36  ;;  %v438_v44 = vrot.slane %v418_v38, 1 }
  0x26   :  { %703 = vmatprep.subr.mxu1 %v589_v39  ;;  %v588_v43 = vsel %vm585_vm3, %v579_v40, %v509_v12  ;;  %v435_v47 = vrot.slane %v1091_v11, 1  ;;  %v546_v48 = vrot.slane %v457_v34, %v1007_v9  ;;  %v165_v49 = vrot.slane %v1095_v16, %v1003_v7 }
  0x27   :  { %704 = vmatpush1.xpose.msra.mxu1 %v588_v43  ;;  %v512_v50 = vrot.slane %v452_v8, 1  ;;  %v454_v51 = vmul.f32 %v438_v44, %v209_v42  ;;  %v558_v52 = vrot.slane %v458_v45, %v1009_v10  ;;  %v437_v53 = vrot.slane %v1095_v16, 1 }
  0x28   :  { %v197_v54 = vrot.slane %v157_v46, %v1003_v7  ;;  %v205_v55 = vrot.slane %v165_v49, %v1003_v7  ;;  %v554_v56 = vrot.slane %v458_v45, %v1007_v9  ;;  %v77_v57 = vrot.slane %v1091_v11, %v1001_v6 }
  0x29   :  { %v599_v58 = vsel %vm567_vm1, %v512_v50, %v550_v41  ;;  %v514_v59 = vrot.slane %v454_v51, 1  ;;  %v464_v60 = vrot.slane %v417_v31, 7  ;;  %v85_v10 = vrot.slane %v1095_v16, %v1001_v6 }
  0x2a   :  { %738 = vmatmul.mubr.f32.vlgmr.msra.gmra.mxu1 %v966_v0  ;;  %771 = vmatprep.subr.mxu0 %v599_v58  ;;  %v451_v61 = vmul.f32 %v435_v47, %v197_v54  ;;  %v453_v62 = vmul.f32 %v437_v53, %v205_v55  ;;  %v117_v63 = vrot.slane %v77_v57, %v999_v5  ;;  %v466_v7 = vrot.slane %v418_v38, 7 }
  0x2b   :  { %877 = vmatprep.mubr.f32.mxu1 %v966_v0  ;;  %v601_v9 = vsel %vm567_vm1, %v514_v59, %v558_v52  ;;  %v573_v1 = vsel %vm567_vm1, 1.0, %v464_v60  ;;  %v125_v2 = vrot.slane %v85_v10, %v999_v5  ;;  %v73_v3 = vrot.slane %v1091_v11, %v999_v5 }
  0x2c   :  { %841 = vmatprep.subr.mxu1 %v601_v9  ;;  %v511_v4 = vrot.slane %v451_v61, 1  ;;  %v513_v6 = vrot.slane %v453_v62, 1  ;;  %v428_v13 = vmul.f32 %v417_v31, %v117_v63  ;;  %v575_v12 = vsel %vm567_vm1, 1.0, %v466_v7  ;;  %v602_v62 = vld [vmem:[#allocation5] sm:$0xf] }
  0x2d   :  { %v430_v14 = vmul.f32 %v418_v38, %v125_v2  ;;  %v113_v15 = vrot.slane %v73_v3, %v999_v5  ;;  %v463_v17 = vrot.slane %v1091_v11, 7  ;;  %v81_v18 = vrot.slane %v1095_v16, %v999_v5 }
  0x2e   :  { %v598_v19 = vsel %vm567_vm1, %v511_v4, %v546_v48  ;;  %v600_v20 = vsel %vm567_vm1, %v513_v6, %v554_v56  ;;  %v488_v21 = vrot.slane %v428_v13, 4  ;;  %v465_v24 = vrot.slane %v1095_v16, 7 }
  0x2f   :  { %842 = vmatpush1.xpose.msra.mxu1 %v600_v20  ;;  %v490_v25 = vrot.slane %v430_v14, 4  ;;  %v427_v31 = vmul.f32 %v113_v15, %v1091_v11  ;;  %v572_v32 = vsel %vm567_vm1, 1.0, %v463_v17  ;;  %v121_v33 = vrot.slane %v81_v18, %v999_v5 }
  0x30   :  { %v582_v34 = vsel %vm576_vm2, %v573_v1, %v488_v21  ;;  %v574_v39 = vsel %vm567_vm1, 1.0, %v465_v24 }
  0x31   :  { %v591_v26 = vsel %vm585_vm3, %v582_v34, %v512_v50  ;;  %v584_v35 = vsel %vm576_vm2, %v575_v12, %v490_v25  ;;  %v487_v36 = vrot.slane %v427_v31, 4  ;;  %v429_v37 = vmul.f32 %v121_v33, %v1095_v16 }
  0x32   :  { %v593_v38 = vsel %vm585_vm3, %v584_v35, %v514_v59 }
  0x33   :  { %843 = vmatprep.subr.mxu1 %v593_v38  ;;  %v581_v11 = vsel %vm576_vm2, %v572_v32, %v487_v36  ;;  %v489_v40 = vrot.slane %v429_v37, 4 }
  0x34   :  { %v590_v41 = vsel %vm585_vm3, %v581_v11, %v511_v4 }
  0x35   :  { %v583_v5 = vsel %vm576_vm2, %v574_v39, %v489_v40 }
  0x36   :  { %v592_v42 = vsel %vm585_vm3, %v583_v5, %v513_v6 }
  0x37   :  { %844 = vmatpush1.xpose.msra.mxu1 %v592_v42 }
  0x3a   :  { %878 = vmatmul.mubr.f32.vlgmr.msra.gmra.mxu1 %v966_v0 }
  0x8a   :  { %v48_v43 = vpop.permute.xlu0 %47 }
  0x8b   :  { %v228_v8 = vpop.permute.xlu1 %227  ;;  %v126_v16 = vmul.f32 %v1035_v22, %v48_v43  ;;  %v127_v44 = vmul.f32 %v1038_v23, %v48_v43  ;;  %v970_v23 = vmov 1.0  }
  0x8c   :  { %v302_v48 = vmul.f32 %v1051_v29, %v228_v8  ;;  %v303_v49 = vmul.f32 %v1054_v30, %v228_v8 }
  0x8f   :  { %v136_v45 = vpop.permute.xlu0 %135 }
  0x90   :  { %v210_v46 = vmul.f32 %v1045_v27, %v136_v45  ;;  %v211_v47 = vmul.f32 %v1048_v28, %v136_v45  ;;  %v341_v52 = vpop.permute.xlu1 %340 }
  0x92   :  { %v218_v50 = vadd.f32 %v210_v46, %v126_v16  ;;  %v219_v51 = vadd.f32 %v211_v47, %v127_v44 }
  0x94   :  { %v310_v53 = vadd.f32 %v302_v48, %v218_v50  ;;  %v311_v54 = vadd.f32 %v303_v49, %v219_v51 }
  0x96   :  { %v343_v55 = vsub.f32 %v310_v53, %v341_v52  ;;  %v344_v56 = vsub.f32 %v311_v54, %v341_v52 }
  0x98   :  { %v351_v57 = vand.u32 2147483647, %v343_v55  ;;  %v352_v22 = vand.u32 2147483647, %v344_v56 }
  0x9a   :  { %vm359_vm4 = vcmp.lt.f32.partialorder %v351_v57, 0.01  ;;  %vm360_vm5 = vcmp.lt.f32.partialorder %v352_v22, 0.01 }
  0x9b   :  { %903 = vmatprep.mubr.msk.f32.mxu0 %vm360_vm5, %v970_v23 }
  0x9c   :  { %904 = vmatmul.mubr.msk.f32.vlgmr.msra.gmra.mxu0 %vm359_vm4, %v970_v23 }
  0x9d   :  { %772 = vmatpush1.xpose.msra.mxu0 %v598_v19  ;;  %807 = vmatprep.mubr.f32.mxu0 %v966_v0 }
  0x9e   :  { %773 = vmatprep.subr.mxu0 %v591_v26 }
  0xa1   :  { %774 = vmatpush1.xpose.msra.mxu0 %v590_v41 }
  0xa4   :  { %808 = vmatmul.mubr.f32.vlgmr.msra.gmra.mxu0 %v966_v0 }
  0xea   :  { %v739_v27 = vpop.f32.mrf.mxu1 }
  0xec   :  { %v741_v28 = vpop.f32.mrf.mxu1 }
  0xfa   :  { %v879_v29 = vpop.f32.mrf.mxu1 }
  0xfc   :  { %v881_v30 = vpop.f32.mrf.mxu1 }
 0x15c   :  { %v669_v58 = vpop.f32.mrf.mxu0 }
 0x15d   :  { %v740_v60 = vadd.f32 %v739_v27, %v669_v58 }
 0x15e   :  { %v671_v59 = vpop.f32.mrf.mxu0 }
 0x164   :  { %v809_v10 = vpop.f32.mrf.mxu0 }
 0x165   :  { %v810_v61 = vadd.f32 %v809_v10, %v740_v60 }
 0x166   :  { %v811_v63 = vpop.f32.mrf.mxu0 }
 0x167   :  { %v880_v7 = vadd.f32 %v879_v29, %v810_v61 }
 0x169   :  { %v883_v9 = vadd.f32 %v880_v7, %v602_v62 }
 0x16b   :  { %885 = vst.msk [vmem:[#allocation5] sm:$0xf] %vm37_vm0, %v883_v9 }
 0x16c   :  { %952 = shalt.err (!%p949_p9)
}
 0x16d   :  { %895 = dma.vmem_to_hbm [thread:$0]  %s893_s19, 64, %s1183_s3, [#allocation4]  }
 0x16e   :  { %963 = dma.done.wait [#allocation4], 64  }
 0x16f   :  { %964 = vsyncadd [#allocation4], 4294967232 }
 0x170   :  { %899 = vsyncpa [#allocation3], 1 }
 0x171   :  { %900 = vsyncpa [#allocation4], 1 }

</bundles_post_ra>
